<compile_context>
chip_gen: v7x
topology: tpu7x:2x2x1
jax: 0.10.0
libtpu: 0.0.40
codegen_flags: <defaults>
</compile_context>

<pallas_src>
import jax
import jax.numpy as jnp
from jax import lax
from jax.experimental import pallas as pl
from jax.experimental.pallas import tpu as pltpu
import numpy as np


def _round_up(x, m):
    return ((x + m - 1) // m) * m


def _choose_tb(B, block_b, n_ohe, n_cov, l_dim):
    """Pick the batch-tile width (lane axis), multiple of 128.

    Conservative per-step VMEM budget so the same tile fits the 16 MiB v5e
    scoped default (and hence v6e's 32 MiB default and v7x's 64 MiB physical).
    Per-column cost: double-buffered idx (2*3), cov (2*n_cov), out (2*l_dim)
    blocks plus ~3x the one-hot intermediate for VPU temporaries.
    """
    vmem_budget = 12 * 1024 * 1024
    bytes_per_col = 4 * (2 * 3 + 2 * n_cov + 2 * l_dim + 3 * n_ohe)
    tb_vmem = max(128, (vmem_budget // bytes_per_col) // 128 * 128)
    tb = min(_round_up(block_b, 128), tb_vmem, _round_up(B, 128))
    if B >= 2 * 128:
        # Keep the grid at >= 2 steps so both v7x TensorCores get work.
        tb = min(tb, _round_up(pl.cdiv(B, 2), 128))
    return max(128, tb)


def tensor_fact_bias_kernel(idx_ref, cov_ref, tab_ohe_ref, tab_cov_ref, out_ref):
    """Fused forward for one batch tile (batch on the lane axis).

    idx_ref     : [3, TB]        int32  pat / meas / t indices, pre-shifted into
                                        stacked-table row coordinates
    cov_ref     : [n_cov, TB]    f32    cov_u^T stacked over cov_w^T
    tab_ohe_ref : [l_dim, n_ohe] f32    stacked (pat|meas|time) embedding table^T
    tab_cov_ref : [l_dim, n_cov] f32    stacked (beta_u|beta_w)^T
    out_ref     : [l_dim, TB]    f32    lane-dense output
    """
    n_ohe = tab_ohe_ref.shape[1]
    tb = idx_ref.shape[1]

    idx = idx_ref[...]                                            # [3, TB]
    riota = lax.broadcasted_iota(jnp.int32, (n_ohe, tb), 0)       # row index
    # The three shifted index ranges are disjoint, so one OR'd one-hot covers
    # the pat + meas + time embedding lookups simultaneously.
    onehot = ((riota == idx[0:1, :])
              | (riota == idx[1:2, :])
              | (riota == idx[2:3, :])).astype(jnp.float32)       # [n_ohe, TB]

    # Split contraction (no concat temporary): embedding gather + covariate
    # term, each a small MXU push, summed on the VPU.
    emb = jnp.dot(tab_ohe_ref[...], onehot,
                  preferred_element_type=jnp.float32)             # [l_dim, TB]
    lin = jnp.dot(tab_cov_ref[...], cov_ref[...],
                  preferred_element_type=jnp.float32)             # [l_dim, TB]
    out_ref[...] = emb + lin


def prepare_tables(params):
    """Stack / transpose the parameter tables once (not per forward call)."""
    table_ohe_t = jnp.concatenate(
        [params["pat_lat"], params["meas_lat"], params["time_lat"]],
        axis=0).astype(jnp.float32).T                             # [l_dim, n_ohe]
    table_cov_t = jnp.concatenate(
        [params["beta_u"], params["beta_w"]],
        axis=0).astype(jnp.float32).T                             # [l_dim, n_cov]
    return table_ohe_t, table_cov_t


def tensor_fact_bias_forward(idx_pat, idx_meas, idx_t, cov_u, cov_w,
                             table_ohe_t, table_cov_t, n_pat, n_meas,
                             block_b=8192):
    B = idx_pat.shape[0]
    l_dim, n_ohe = table_ohe_t.shape
    n_cov = table_cov_t.shape[1]

    tb = _choose_tb(B, block_b, n_ohe, n_cov, l_dim)
    grid = (pl.cdiv(B, tb),)

    # Shift indices so each addresses its row of the stacked table directly.
    idx = jnp.stack([
        idx_pat.astype(jnp.int32),
        idx_meas.astype(jnp.int32) + n_pat,
        idx_t.astype(jnp.int32) + n_pat + n_meas,
    ], axis=0)                                                    # [3, B]

    # Covariates, batch-on-lanes.
    cov_t = jnp.concatenate(
        [cov_u.astype(jnp.float32).T, cov_w.astype(jnp.float32).T],
        axis=0)                                                   # [n_cov, B]

    out_t = pl.pallas_call(
        tensor_fact_bias_kernel,
        out_shape=jax.ShapeDtypeStruct((l_dim, B), jnp.float32),
        grid=grid,
        in_specs=[
            pl.BlockSpec((3, tb), lambda i: (0, i)),              # indices
            pl.BlockSpec((n_cov, tb), lambda i: (0, i)),          # covariates
            pl.BlockSpec((l_dim, n_ohe), lambda i: (0, 0)),       # embedding table^T
            pl.BlockSpec((l_dim, n_cov), lambda i: (0, 0)),       # beta table^T
        ],
        out_specs=pl.BlockSpec((l_dim, tb), lambda i: (0, i)),
        compiler_params=pltpu.CompilerParams(
            dimension_semantics=("parallel",)),
    )(idx, cov_t, table_ohe_t, table_cov_t)

    return out_t.T                                                # [B, l_dim]


def init_params(key, n_pat=10, n_meas=5, n_t=25, l_dim=1, n_u=2, n_w=3):
    ks = jax.random.split(key, 5)
    return {
        "pat_lat":  0.25 * jax.random.normal(ks[0], (n_pat, l_dim), jnp.float32),
        "meas_lat": 0.25 * jax.random.normal(ks[1], (n_meas, l_dim), jnp.float32),
        "time_lat": jax.random.normal(ks[2], (n_t, l_dim), jnp.float32),
        "beta_u":   0.05 * jax.random.normal(ks[3], (n_u, l_dim), jnp.float32),
        "beta_w":   0.05 * jax.random.normal(ks[4], (n_w, l_dim), jnp.float32),
    }


def reference_forward(idx_pat, idx_meas, idx_t, cov_u, cov_w, params):
    return (params["pat_lat"][idx_pat]
            + cov_u @ params["beta_u"]
            + params["meas_lat"][idx_meas]
            + (params["time_lat"][idx_t] + cov_w @ params["beta_w"]))


if __name__ == "__main__":
    # Module defaults: n_pat=10, n_meas=5, n_t=25, l_dim=1, n_u=2, n_w=3
    n_pat, n_meas, n_t, l_dim, n_u, n_w = 10, 5, 25, 1, 2, 3
    B = 8

    key = jax.random.PRNGKey(0)
    kp, ki1, ki2, ki3, ku, kw = jax.random.split(key, 6)

    params = init_params(kp, n_pat, n_meas, n_t, l_dim, n_u, n_w)
    table_ohe_t, table_cov_t = prepare_tables(params)

    idx_pat = jax.random.randint(ki1, (B,), 0, n_pat, dtype=jnp.int32)
    idx_meas = jax.random.randint(ki2, (B,), 0, n_meas, dtype=jnp.int32)
    idx_t = jax.random.randint(ki3, (B,), 0, n_t, dtype=jnp.int32)
    cov_u = jax.random.normal(ku, (B, n_u), jnp.float32)
    cov_w = jax.random.normal(kw, (B, n_w), jnp.float32)

    pred = tensor_fact_bias_forward(idx_pat, idx_meas, idx_t, cov_u, cov_w,
                                    table_ohe_t, table_cov_t, n_pat, n_meas)
    pred = jax.block_until_ready(pred)

    ref = reference_forward(idx_pat, idx_meas, idx_t, cov_u, cov_w, params)
    np.testing.assert_allclose(np.asarray(pred), np.asarray(ref),
                               rtol=1e-5, atol=1e-5)

    print("KERNEL_OK")
</pallas_src>

<mosaic_0001>
module attributes {stable_mosaic.version = 11 : i64} {
  func.func @tensor_fact_bias_kernel(%arg0: i32, %arg1: memref<3x128xi32, #tpu.memory_space<vmem>>, %arg2: memref<5x128xf32, #tpu.memory_space<vmem>>, %arg3: memref<1x40xf32, #tpu.memory_space<vmem>>, %arg4: memref<1x5xf32, #tpu.memory_space<vmem>>, %arg5: memref<1x128xf32, #tpu.memory_space<vmem>>) attributes {dimension_semantics = [#tpu.dimension_semantics<parallel>], iteration_bounds = array<i64: 1>, scalar_prefetch = 0 : i64, scratch_operands = 0 : i64, tpu.core_type = #tpu.core_type<tc>, window_params = [{transform_indices = @transform_0, window_bounds = array<i64: 3, 128>}, {transform_indices = @transform_1, window_bounds = array<i64: 5, 128>}, {pipeline_mode = #tpu.pipeline_mode<synchronous>, transform_indices = @transform_2, window_bounds = array<i64: 1, 40>}, {pipeline_mode = #tpu.pipeline_mode<synchronous>, transform_indices = @transform_3, window_bounds = array<i64: 1, 5>}, {transform_indices = @transform_4, window_bounds = array<i64: 1, 128>}]} {
    %c0 = arith.constant 0 : index
    %c0_0 = arith.constant 0 : index
    %0 = vector.load %arg1[%c0, %c0_0] : memref<3x128xi32, #tpu.memory_space<vmem>>, vector<3x128xi32>
    %1 = tpu.iota {dimensions = array<i32: 0>} : vector<40x128xi32>
    %2 = vector.extract_strided_slice %0 {offsets = [0, 0], sizes = [1, 128], strides = [1, 1]} : vector<3x128xi32> to vector<1x128xi32>
    %3 = vector.broadcast %2 : vector<1x128xi32> to vector<40x128xi32>
    %4 = arith.cmpi eq, %1, %3 : vector<40x128xi32>
    %5 = vector.extract_strided_slice %0 {offsets = [1, 0], sizes = [1, 128], strides = [1, 1]} : vector<3x128xi32> to vector<1x128xi32>
    %6 = vector.broadcast %5 : vector<1x128xi32> to vector<40x128xi32>
    %7 = arith.cmpi eq, %1, %6 : vector<40x128xi32>
    %8 = arith.ori %4, %7 : vector<40x128xi1>
    %9 = vector.extract_strided_slice %0 {offsets = [2, 0], sizes = [1, 128], strides = [1, 1]} : vector<3x128xi32> to vector<1x128xi32>
    %10 = vector.broadcast %9 : vector<1x128xi32> to vector<40x128xi32>
    %11 = arith.cmpi eq, %1, %10 : vector<40x128xi32>
    %12 = arith.ori %8, %11 : vector<40x128xi1>
    %13 = arith.extui %12 : vector<40x128xi1> to vector<40x128xi32>
    %14 = arith.sitofp %13 : vector<40x128xi32> to vector<40x128xf32>
    %c0_1 = arith.constant 0 : index
    %c0_2 = arith.constant 0 : index
    %15 = vector.load %arg3[%c0_1, %c0_2] : memref<1x40xf32, #tpu.memory_space<vmem>>, vector<1x40xf32>
    %cst = arith.constant dense<0.000000e+00> : vector<1x128xf32>
    %16 = tpu.matmul %15, %14, %cst {dimension_numbers = #tpu.dot_dimension_numbers<[1], [0], [0], [1], [0, 0, 1, 1], [], []>} : vector<1x40xf32>, vector<40x128xf32>, vector<1x128xf32> -> vector<1x128xf32>
    %c0_3 = arith.constant 0 : index
    %c0_4 = arith.constant 0 : index
    %17 = vector.load %arg4[%c0_3, %c0_4] : memref<1x5xf32, #tpu.memory_space<vmem>>, vector<1x5xf32>
    %c0_5 = arith.constant 0 : index
    %c0_6 = arith.constant 0 : index
    %18 = vector.load %arg2[%c0_5, %c0_6] : memref<5x128xf32, #tpu.memory_space<vmem>>, vector<5x128xf32>
    %cst_7 = arith.constant dense<0.000000e+00> : vector<1x128xf32>
    %19 = tpu.matmul %17, %18, %cst_7 {dimension_numbers = #tpu.dot_dimension_numbers<[1], [0], [0], [1], [0, 0, 1, 1], [], []>} : vector<1x5xf32>, vector<5x128xf32>, vector<1x128xf32> -> vector<1x128xf32>
    %20 = arith.addf %16, %19 : vector<1x128xf32>
    %c0_8 = arith.constant 0 : index
    %c0_9 = arith.constant 0 : index
    %21 = vector.load %arg5[%c0_8, %c0_9] : memref<1x128xf32, #tpu.memory_space<vmem>>, vector<1x128xf32>
    tpu.vector_store %arg5[%c0_8, %c0_9], %20 {strides = array<i32>} : memref<1x128xf32, #tpu.memory_space<vmem>>, vector<1x128xf32>,
    return
  }
  func.func @transform_0(%arg0: i32) -> (i32, i32) {
    %c0_i32 = arith.constant 0 : i32
    %c0_i32_0 = arith.constant 0 : i32
    return %c0_i32, %arg0 : i32, i32
  }
  func.func @transform_1(%arg0: i32) -> (i32, i32) {
    %c0_i32 = arith.constant 0 : i32
    %c0_i32_0 = arith.constant 0 : i32
    return %c0_i32, %arg0 : i32, i32
  }
  func.func @transform_2(%arg0: i32) -> (i32, i32) {
    %c0_i32 = arith.constant 0 : i32
    %c0_i32_0 = arith.constant 0 : i32
    %c0_i32_1 = arith.constant 0 : i32
    return %c0_i32, %c0_i32_0 : i32, i32
  }
  func.func @transform_3(%arg0: i32) -> (i32, i32) {
    %c0_i32 = arith.constant 0 : i32
    %c0_i32_0 = arith.constant 0 : i32
    %c0_i32_1 = arith.constant 0 : i32
    return %c0_i32, %c0_i32_0 : i32, i32
  }
  func.func @transform_4(%arg0: i32) -> (i32, i32) {
    %c0_i32 = arith.constant 0 : i32
    %c0_i32_0 = arith.constant 0 : i32
    return %c0_i32, %arg0 : i32, i32
  }
}

</mosaic_0001>

<bundles_post_ra>
// kernel: tpu_custom_call.1
= control target key start
LH: loop header
LB: loop body
LE: loop exit
PB: predicated region body
PF: predicated region fallthrough
CT: control target
= control target key end

     0   :  { %9 = vsyncpa [#allocation3], 0  ;;  %s469_s0 = inlined_call_operand.hbm [shape: s32[3,8], index: 0, kind: input, shape index: {}]   ;;  %s470_s1 = inlined_call_operand.hbm [shape: f32[5,8], index: 1, kind: input, shape index: {}]   ;;  %s471_s2 = inlined_call_operand.vmem [shape: f32[1,40], index: 2, kind: input, shape index: {}]   ;;  %s472_s3 = inlined_call_operand.vmem [shape: f32[1,5], index: 3, kind: input, shape index: {}]   ;;  %s473_s4 = inlined_call_operand.hbm [shape: f32[1,8], index: 4, kind: output, shape index: {}]  }
   0x1   :  { %10 = vsyncpa [#allocation6], 0 }
   0x2   :  { %11 = vsyncpa [#allocation4], 0  ;;  %s394_s15 = smov [#allocation2]   ;;  %s395_s17 = smov [#allocation5]  }
   0x3   :  { %s18_s16 = sshll.u32 %s394_s15, 4  ;;  %s28_s18 = sshll.u32 %s395_s17, 4  ;;  %s19_s16 = int_to_ptr.vmem [resolvable:$true] %s18_s16  ;;  %s29_s18 = int_to_ptr.vmem [resolvable:$true] %s28_s18 }
   0x4   :  { %s322_s21 = scalar_lea.hbm %s469_s0, 64 }
   0x5   :  { %p323_p0 = scmp.ne.s32.totalorder %s469_s0, %s322_s21  ;;  %p326_p1 = scmp.lt.u32.totalorder %s322_s21, %s469_s0 }
   0x7   :  { %p328_p2 = pnand %p326_p1, %p323_p0 }
   0x9   :  { %331 = shalt.err (!%p328_p2)
}
   0xa   :  { %s332_s26 = scalar_lea.vmem %s19_s16, 64  ;;  %p337_p4 = scmp.lt.s32.totalorder %s19_s16, %s19_s16 }
   0xb   :  { %p333_p3 = scmp.ne.s32.totalorder %s19_s16, %s332_s26  ;;  %p338_p5 = scmp.lt.s32.totalorder %s332_s26, %s332_s26 }
   0xd   :  { %p339_p6 = por %p338_p5, %p337_p4 }
   0xf   :  { %p340_p7 = pnand %p339_p6, %p333_p3 }
  0x11   :  { %343 = shalt.err (!%p340_p7)
}
  0x12   :  { %21 = dma.hbm_to_vmem [thread:$0]  %s469_s0, 64, %s19_s16, [#allocation3]  }
  0x13   :  { %s344_s5 = scalar_lea.hbm %s470_s1, 128 }
  0x14   :  { %p345_p8 = scmp.ne.s32.totalorder %s470_s1, %s344_s5  ;;  %p348_p9 = scmp.lt.u32.totalorder %s344_s5, %s470_s1 }
  0x16   :  { %p350_p10 = pnand %p348_p9, %p345_p8 }
  0x18   :  { %353 = shalt.err (!%p350_p10)
}
  0x19   :  { %s354_s10 = scalar_lea.vmem %s29_s18, 128  ;;  %p359_p12 = scmp.lt.s32.totalorder %s29_s18, %s29_s18 }
  0x1a   :  { %p355_p11 = scmp.ne.s32.totalorder %s29_s18, %s354_s10  ;;  %p360_p13 = scmp.lt.s32.totalorder %s354_s10, %s354_s10 }
  0x1c   :  { %p361_p0 = por %p360_p13, %p359_p12 }
  0x1e   :  { %p362_p1 = pnand %p361_p0, %p355_p11 }
  0x20   :  { %365 = shalt.err (!%p362_p1)
}
  0x21   :  { %31 = dma.hbm_to_vmem [thread:$0]  %s470_s1, 128, %s29_s18, [#allocation6]  }
  0x22   :  { %388 = dma.done.wait [#allocation3], 64  }
  0x23   :  { %389 = vsyncadd [#allocation3], 4294967232 }
  0x24   :  { %390 = dma.done.wait [#allocation6], 128  }
  0x25   :  { %391 = vsyncadd [#allocation6], 4294967168  ;;  %v43_v0 = vlaneseq  ;;  %v396_v1 = vmov 0.0|0.0   ;;  %v397_v2 = vmov 0.0   ;;  %vm398_vm0 = vmmov 0   ;;  %s401_s14 = smov [#allocation7]  }
  0x26   :  { %307 = vmatprep.subr.bf16.mxu0 %v396_v1  ;;  %289 = vmatprep.subr.mxu1 %v397_v2  ;;  %vm103_vm1 = vcmask 1044480   ;;  %vm99_vm2 = vcmask 39936   ;;  %v42_v8 = vld [vmem:[#allocation2] sm:$0x7]  ;;  %v98_v9 = vld [vmem:[#allocation5] sm:$0x1f] }
  0x27   :  { %v44_v3 = vshrl.u32 %v43_v0, 7  ;;  %291 = vmatprep.mubr.msk.f32.mxu1 %vm398_vm0, %v397_v2  ;;  %304 = vmatprep.mubr.msk.f32.mxu0 %vm398_vm0, %v397_v2  ;;  %v97_v10 = vld [vmem:[%s472_s3] sm:$0x1]  ;;  %v399_v17 = vmov 1.0|1.0   ;;  %v400_v19 = vmov 1.0  }
  0x28   :  { %290 = vmatpush3.msk.msra.mxu1 %vm103_vm1, %v98_v9  ;;  %v96_v18 = vld [vmem:[%s471_s2] sm:$0x1]  ;;  %s258_s15 = sshll.u32 %s401_s14, 4  ;;  %s259_s15 = int_to_ptr.vmem [resolvable:$true] %s258_s15 }
  0x29   :  { %v51_v4 = vsub.s32 0, %v44_v3  ;;  %v60_v5 = vsub.s32 1, %v44_v3  ;;  %v74_v6 = vsub.s32 2, %v44_v3  ;;  %v45_v7 = vadd.s32 8, %v44_v3  ;;  %292 = vmatmul.mubr.msk.f32.vlgmr.msra.gmra.mrb[0].mxu1 %vm99_vm2, %v97_v10  ;;  %s366_s16 = scalar_lea.vmem %s259_s15, 16  ;;  %s370_s17 = scalar_lea.vmem %s259_s15, 32 }
  0x2a   :  { %v46_v14 = vadd.s32 16, %v44_v3  ;;  %v47_v15 = vadd.s32 24, %v44_v3  ;;  %v48_v16 = vadd.s32 32, %v44_v3  ;;  %p367_p2 = scmp.ne.s32.totalorder %s259_s15, %s366_s16  ;;  %p371_p3 = scmp.lt.s32.totalorder %s259_s15, %s259_s15 }
  0x2b   :  { %v52_v11 = vrot.slane %v42_v8, %v51_v4  ;;  %v61_v12 = vrot.slane %v42_v8, %v60_v5  ;;  %v75_v13 = vrot.slane %v42_v8, %v74_v6  ;;  %p372_p4 = scmp.lt.s32.totalorder %s370_s17, %s366_s16 }
  0x2d   :  { %vm53_vm3 = vcmp.eq.s32.totalorder %v44_v3, %v52_v11  ;;  %vm54_vm4 = vcmp.eq.s32.totalorder %v45_v7, %v52_v11  ;;  %vm62_vm5 = vcmp.eq.s32.totalorder %v44_v3, %v61_v12  ;;  %vm63_vm6 = vcmp.eq.s32.totalorder %v45_v7, %v61_v12  ;;  %p373_p5 = por %p372_p4, %p371_p3 }
  0x2e   :  { %vm67_vm7 = vmor %vm53_vm3, %vm62_vm5  ;;  %vm76_vm8 = vcmp.eq.s32.totalorder %v44_v3, %v75_v13  ;;  %vm77_vm9 = vcmp.eq.s32.totalorder %v45_v7, %v75_v13  ;;  %vm55_vm12 = vcmp.eq.s32.totalorder %v46_v14, %v52_v11  ;;  %vm64_vm13 = vcmp.eq.s32.totalorder %v46_v14, %v61_v12 }
  0x2f   :  { %vm68_vm10 = vmor %vm54_vm4, %vm63_vm6  ;;  %vm56_vm15 = vcmp.eq.s32.totalorder %v47_v15, %v52_v11  ;;  %vm65_vm0 = vcmp.eq.s32.totalorder %v47_v15, %v61_v12  ;;  %vm78_vm2 = vcmp.eq.s32.totalorder %v46_v14, %v75_v13  ;;  %vm79_vm5 = vcmp.eq.s32.totalorder %v47_v15, %v75_v13  ;;  %p374_p6 = pnand %p373_p5, %p367_p2 }
  0x30   :  { %vm81_vm11 = vmor %vm67_vm7, %vm76_vm8  ;;  %vm57_vm7 = vcmp.eq.s32.totalorder %v48_v16, %v52_v11  ;;  %vm66_vm8 = vcmp.eq.s32.totalorder %v48_v16, %v61_v12 }
  0x31   :  { %vm82_vm14 = vmor %vm68_vm10, %vm77_vm9  ;;  %vm80_vm10 = vcmp.eq.s32.totalorder %v48_v16, %v75_v13 }
  0x32   :  { %vm308_vm1 = vmpackc.low %vm82_vm14, %vm81_vm11 }
  0x33   :  { %309 = vmatpush3.bf16.msk.msra.mxu0 %vm308_vm1, %v399_v17  ;;  %vm69_vm3 = vmor %vm55_vm12, %vm64_vm13  ;;  %vm177_vm12 = vcmask 326656  }
  0x34   :  { %310 = vmatprep.subr.bf16.mxu0 %v396_v1  ;;  %vm70_vm4 = vmor %vm56_vm15, %vm65_vm0 }
  0x35   :  { %vm83_vm6 = vmor %vm69_vm3, %vm78_vm2 }
  0x36   :  { %vm84_vm9 = vmor %vm70_vm4, %vm79_vm5 }
  0x37   :  { %vm311_vm11 = vmpackc.low %vm84_vm9, %vm83_vm6 }
  0x38   :  { %312 = vmatpush3.bf16.msk.msra.mxu0 %vm311_vm11, %v399_v17  ;;  %vm71_vm14 = vmor %vm57_vm7, %vm66_vm8 }
  0x39   :  { %302 = vmatprep.subr.mxu0 %v397_v2  ;;  %vm85_vm1 = vmor %vm71_vm14, %vm80_vm10 }
  0x3c   :  { %303 = vmatpush3.msk.msra.mxu0 %vm85_vm1, %v400_v19 }
  0x3d   :  { %305 = vmatmul.mubr.msk.f32.vlgmr.msra.gmra.mrb[0].mxu0 %vm177_vm12, %v96_v18 }
  0xfc   :  { %v173_v20 = vpop.f32.mrb[0].mxu1 }
  0xfd   :  { %v293_v21 = vpop.f32.mrb[1].mxu1 }
 0x110   :  { %v247_v22 = vpop.f32.mrb[0].mxu0 }
 0x111   :  { %v248_v23 = vadd.f32 %v247_v22, %v173_v20  ;;  %v306_v24 = vpop.f32.mrb[1].mxu0 }
 0x113   :  { %251 = vst [vmem:[#allocation7] sm:$0x1] %v248_v23 }
 0x114   :  { %377 = shalt.err (!%p374_p6)
}
 0x115   :  { %s378_s19 = scalar_lea.hbm %s473_s4, 16 }
 0x116   :  { %p379_p7 = scmp.ne.s32.totalorder %s473_s4, %s378_s19  ;;  %p382_p8 = scmp.lt.u32.totalorder %s378_s19, %s473_s4 }
 0x118   :  { %p384_p9 = pnand %p382_p8, %p379_p7 }
 0x11a   :  { %387 = shalt.err (!%p384_p9)
}
 0x11b   :  { %261 = dma.vmem_to_hbm [thread:$0]  %s259_s15, 16, %s473_s4, [#allocation4]  }
 0x11c   :  { %392 = dma.done.wait [#allocation4], 16  }
 0x11d   :  { %393 = vsyncadd [#allocation4], 4294967280 }
 0x11e   :  { %265 = vsyncpa [#allocation3], 1 }
 0x11f   :  { %266 = vsyncpa [#allocation6], 1 }
 0x120   :  { %267 = vsyncpa [#allocation4], 1 }

</bundles_post_ra>
